<compile_context>
chip_gen: v6e
topology: v6e:2x2x1
jax: 0.10.0
libtpu: 0.0.40
codegen_flags: <defaults>
</compile_context>

<pallas_src>
import functools
import math

import jax
import jax.numpy as jnp
from jax import lax
from jax.experimental import pallas as pl
from jax.experimental.pallas import tpu as pltpu


def _round_up(v, m):
    return ((v + m - 1) // m) * m


def _tpu_vmem_capacity_bytes():
    try:
        info = pltpu.get_tpu_info()
        cap = int(getattr(info, "vmem_capacity_bytes", 0) or 0)
        if cap > 0:
            return cap
    except Exception:
        pass
    return 128 << 20  # v5e/v6e default; v7x (64 MiB) is used when detectable


def _choose_tile_m(m, k_pad, c_out_pad, in_itemsize, out_itemsize, tile_budget_bytes):
    # Double-buffered patches-in + output tiles dominate VMEM use.
    per_col = 2 * (k_pad * in_itemsize + c_out_pad * out_itemsize)
    t = max(128, tile_budget_bytes // max(per_col, 1))
    t = (t // 128) * 128
    t = int(min(t, 2048))                       # diminishing returns past ~1-2K lanes
    t = int(min(t, _round_up(max(m, 1), 128)))  # no point tiling past the problem
    return max(t, 128)


def _nan_to_num(v):
    # torch.nan_to_num semantics: nan -> 0, +inf -> dtype max, -inf -> dtype min.
    finfo = jnp.finfo(v.dtype)
    clipped = jnp.clip(v, finfo.min, finfo.max)          # handles +/-inf
    return jnp.where(jnp.isnan(v), jnp.zeros_like(v), clipped)


def _conv_bn_act_kernel(activation_type, m_valid, tile_m, m_padded,
                        patch_ref, w_ref, b_ref, g_ref, beta_ref,
                        o_ref,
                        sum_ref, sumsq_ref, scale_ref, shift_ref):
    p = pl.program_id(0)   # phase: 0 = batch-stat accumulation, 1 = normalize+activate
    i = pl.program_id(1)   # tile index along M = N * L_out

    @pl.when((p == 0) & (i == 0))
    def _init_stats():
        sum_ref[...] = jnp.zeros_like(sum_ref)
        sumsq_ref[...] = jnp.zeros_like(sumsq_ref)

    # Conv1d tile as a matmul (recomputed in phase 1; weights stay VMEM-resident).
    conv = jnp.dot(w_ref[...], patch_ref[...],
                   preferred_element_type=jnp.float32) + b_ref[...]
    conv = _nan_to_num(conv)                             # check_and_handle_nan(conv_output)

    @pl.when(p == 0)
    def _accumulate():
        if m_padded != m_valid:
            # Columns beyond the true M (zero padding of the last tile) must not
            # contribute to the batch statistics.  Built only in phase 0 and only
            # when padding actually exists.
            col = lax.broadcasted_iota(jnp.int32, conv.shape, 1) + i * tile_m
            c = jnp.where(col < m_valid, conv, 0.0)
        else:
            c = conv
        sum_ref[...] += jnp.sum(c, axis=-1, keepdims=True)
        sumsq_ref[...] += jnp.sum(c * c, axis=-1, keepdims=True)

    @pl.when((p == 1) & (i == 0))
    def _finalize_stats():
        inv_cnt = jnp.float32(1.0 / m_valid)             # trace-time constant
        mean = sum_ref[...] * inv_cnt
        # one-pass variance in f32; clamp against E[x^2]-E[x]^2 cancellation
        var = jnp.maximum(sumsq_ref[...] * inv_cnt - mean * mean, 0.0)
        scale = g_ref[...] * lax.rsqrt(var + 1e-5)
        scale_ref[...] = scale
        shift_ref[...] = beta_ref[...] - mean * scale

    @pl.when(p == 1)
    def _normalize_activate():
        norm = _nan_to_num(conv * scale_ref[...] + shift_ref[...])   # BN + nan fix
        if activation_type == "leaky_relu":
            act = jnp.where(norm >= 0, norm, 0.01 * norm)            # nn.LeakyReLU default
        elif activation_type == "gelu":
            act = 0.5 * norm * (1.0 + lax.erf(norm * (1.0 / math.sqrt(2.0))))  # exact GELU
        else:  # tanh
            act = jnp.tanh(norm)
        o_ref[...] = _nan_to_num(act).astype(o_ref.dtype)            # final nan fix


def conv1d_block_with_activation(x, params, *, kernel_size, activation_type,
                                 stride=1, transpose=False, dropout=False,
                                 dropout_proba=0.2, matmul_dtype=None, tile_m=None):
    """x: (N, C_in, L) -> (N, C_out, L_out). Fused Conv1d + BatchNorm1d(train) + activation."""
    assert activation_type in ("leaky_relu", "gelu", "tanh")
    # TODO(synk): transpose=True (nn.ConvTranspose1d) has no Pallas path here.
    assert not transpose, "ConvTranspose1d path not implemented"
    # TODO(synk): dropout=True (training-mode nn.Dropout) not implemented; module default is off.
    assert not dropout, "dropout path not implemented"
    del dropout_proba

    n, c_in, l = x.shape
    w, b, gamma, beta = params["w"], params["b"], params["gamma"], params["beta"]
    c_out = int(w.shape[0])
    k = int(kernel_size)
    l_out = (l - k) // stride + 1
    m = n * l_out

    # ---- im2col via K strided slices (no gather), transposed / lane-dense layout ----
    # patches[c*K + kk, n*L_out + j] = x[n, c, j*stride + kk]
    cols = [x[:, :, kk: kk + (l_out - 1) * stride + 1: stride] for kk in range(k)]
    pat = jnp.stack(cols, axis=0)                 # (K, N, C_in, L_out)
    pat = jnp.transpose(pat, (2, 0, 1, 3))        # (C_in, K, N, L_out); lane axis untouched
    pat = pat.reshape(c_in * k, m)                # (C_in*K, M)

    # ---- padding: sublane dims to x8, lane (M) dim to a multiple of the tile ----
    k_rows = c_in * k
    k_pad = _round_up(k_rows, 8)
    c_out_pad = _round_up(c_out, 8)

    mm_dtype = matmul_dtype if matmul_dtype is not None else x.dtype
    in_itemsize = jnp.dtype(mm_dtype).itemsize
    out_itemsize = jnp.dtype(x.dtype).itemsize

    cap = _tpu_vmem_capacity_bytes()
    tile_budget = cap // 8          # v5e/v6e: 16 MiB, v7x: 8 MiB of tile VMEM
    vmem_limit = int(cap // 2)      # v5e/v6e: 64 MiB, v7x: 32 MiB scoped limit
    if tile_m is None:
        tile_m = _choose_tile_m(m, k_pad, c_out_pad, in_itemsize, out_itemsize, tile_budget)
    m_pad = _round_up(m, tile_m)
    num_m_tiles = m_pad // tile_m

    pat = jnp.pad(pat, ((0, k_pad - k_rows), (0, m_pad - m))).astype(mm_dtype)
    w2 = jnp.pad(w.reshape(c_out, k_rows),
                 ((0, c_out_pad - c_out), (0, k_pad - k_rows))).astype(mm_dtype)
    b2 = jnp.pad(b, (0, c_out_pad - c_out)).reshape(c_out_pad, 1).astype(jnp.float32)
    g2 = jnp.pad(gamma, (0, c_out_pad - c_out)).reshape(c_out_pad, 1).astype(jnp.float32)
    beta2 = jnp.pad(beta, (0, c_out_pad - c_out)).reshape(c_out_pad, 1).astype(jnp.float32)

    kernel = functools.partial(_conv_bn_act_kernel, activation_type, m, tile_m, m_pad)
    out = pl.pallas_call(
        kernel,
        out_shape=jax.ShapeDtypeStruct((c_out_pad, m_pad), x.dtype),
        grid_spec=pltpu.PrefetchScalarGridSpec(
            num_scalar_prefetch=0,
            grid=(2, num_m_tiles),   # (phase, M tile); phase is the outer loop
            in_specs=[
                pl.BlockSpec((k_pad, tile_m), lambda p, i: (0, i)),      # patches tile
                pl.BlockSpec((c_out_pad, k_pad), lambda p, i: (0, 0)),   # weights  (resident)
                pl.BlockSpec((c_out_pad, 1), lambda p, i: (0, 0)),       # bias     (resident)
                pl.BlockSpec((c_out_pad, 1), lambda p, i: (0, 0)),       # gamma    (resident)
                pl.BlockSpec((c_out_pad, 1), lambda p, i: (0, 0)),       # beta     (resident)
            ],
            # i*p: every phase-0 step maps to block 0 and writes nothing, so no
            # garbage write-backs; phase 1 streams lane-dense (C_out, TILE_M) tiles.
            out_specs=pl.BlockSpec((c_out_pad, tile_m), lambda p, i: (0, i * p)),
            scratch_shapes=[pltpu.VMEM((c_out_pad, 1), jnp.float32) for _ in range(4)],
        ),
        compiler_params=pltpu.CompilerParams(
            # Both axes 'arbitrary': the phase axis is sequential and global BN
            # statistics accumulate across M tiles. (Marking the M axis
            # 'parallel' on v7x would need per-core stats + a cross-core combine.)
            dimension_semantics=("arbitrary", "arbitrary"),
            vmem_limit_bytes=vmem_limit,
        ),
    )(pat, w2, b2, g2, beta2)

    out = out[:c_out, :m]                         # strip channel / M padding
    out = out.reshape(c_out, n, l_out)
    return jnp.transpose(out, (1, 0, 2))          # (N, C_out, L_out)


def _reference_conv_block(x, params, kernel_size, activation_type, stride):
    """Pure-JAX reference (mirrors the PyTorch forward, training-mode BN)."""
    w, b, gamma, beta = params["w"], params["b"], params["gamma"], params["beta"]
    conv = lax.conv_general_dilated(
        x, w, window_strides=(stride,), padding="VALID",
        dimension_numbers=("NCH", "OIH", "NCH"), precision=lax.Precision.HIGHEST)
    conv = jnp.nan_to_num(conv + b[None, :, None])
    mean = jnp.mean(conv, axis=(0, 2), keepdims=True)
    var = jnp.mean(jnp.square(conv - mean), axis=(0, 2), keepdims=True)
    norm = (conv - mean) * lax.rsqrt(var + 1e-5)
    norm = jnp.nan_to_num(norm * gamma[None, :, None] + beta[None, :, None])
    if activation_type == "leaky_relu":
        act = jnp.where(norm >= 0, norm, 0.01 * norm)
    elif activation_type == "gelu":
        act = 0.5 * norm * (1.0 + lax.erf(norm / math.sqrt(2.0)))
    else:
        act = jnp.tanh(norm)
    return jnp.nan_to_num(act)


def init_conv_block_params(key, c_in, c_out, kernel_size):
    kw, kb = jax.random.split(key)
    fan_in = c_in * kernel_size
    bound = 1.0 / math.sqrt(fan_in)
    w = jax.random.uniform(kw, (c_out, c_in, kernel_size), jnp.float32, -bound, bound)
    b = jax.random.uniform(kb, (c_out,), jnp.float32, -bound, bound)
    gamma = jnp.ones((c_out,), jnp.float32)    # BatchNorm1d default init
    beta = jnp.zeros((c_out,), jnp.float32)
    return {"w": w, "b": b, "gamma": gamma, "beta": beta}


if __name__ == "__main__":
    N, C_IN, C_OUT, L = 2, 4, 8, 64
    key = jax.random.PRNGKey(0)
    k_par, k_x = jax.random.split(key)
    x = jax.random.normal(k_x, (N, C_IN, L), jnp.float32)

    configs = [
        dict(kernel_size=4, stride=2, activation_type="leaky_relu"),
        dict(kernel_size=3, stride=1, activation_type="gelu"),
        dict(kernel_size=3, stride=1, activation_type="tanh"),
    ]
    cfg_keys = jax.random.split(k_par, len(configs))
    for cfg, ck in zip(configs, cfg_keys):
        params = init_conv_block_params(ck, C_IN, C_OUT, cfg["kernel_size"])
        fwd = jax.jit(functools.partial(conv1d_block_with_activation, **cfg))
        out = fwd(x, params)
        jax.block_until_ready(out)

        l_out = (L - cfg["kernel_size"]) // cfg["stride"] + 1
        assert out.shape == (N, C_OUT, l_out), out.shape

        ref = _reference_conv_block(x, params, cfg["kernel_size"],
                                    cfg["activation_type"], cfg["stride"])
        assert jnp.allclose(out, ref, rtol=2e-2, atol=2e-2), (
            "max abs err", float(jnp.max(jnp.abs(out - ref))))

    print("KERNEL_OK")
</pallas_src>

<mosaic_0001>
module attributes {stable_mosaic.version = 11 : i64} {
  func.func @_conv_bn_act_kernel(%arg0: i32, %arg1: i32, %arg2: memref<16x128xf32, #tpu.memory_space<vmem>>, %arg3: memref<8x16xf32, #tpu.memory_space<vmem>>, %arg4: memref<8x1xf32, #tpu.memory_space<vmem>>, %arg5: memref<8x1xf32, #tpu.memory_space<vmem>>, %arg6: memref<8x1xf32, #tpu.memory_space<vmem>>, %arg7: memref<8x128xf32, #tpu.memory_space<vmem>>, %arg8: memref<8x1xf32, #tpu.memory_space<vmem>>, %arg9: memref<8x1xf32, #tpu.memory_space<vmem>>, %arg10: memref<8x1xf32, #tpu.memory_space<vmem>>, %arg11: memref<8x1xf32, #tpu.memory_space<vmem>>) attributes {dimension_semantics = [#tpu.dimension_semantics<arbitrary>, #tpu.dimension_semantics<arbitrary>], iteration_bounds = array<i64: 2, 1>, scalar_prefetch = 0 : i64, scratch_operands = 4 : i64, tpu.core_type = #tpu.core_type<tc>, window_params = [{transform_indices = @transform_0, window_bounds = array<i64: 16, 128>}, {pipeline_mode = #tpu.pipeline_mode<synchronous>, transform_indices = @transform_1, window_bounds = array<i64: 8, 16>}, {pipeline_mode = #tpu.pipeline_mode<synchronous>, transform_indices = @transform_2, window_bounds = array<i64: 8, 1>}, {pipeline_mode = #tpu.pipeline_mode<synchronous>, transform_indices = @transform_3, window_bounds = array<i64: 8, 1>}, {pipeline_mode = #tpu.pipeline_mode<synchronous>, transform_indices = @transform_4, window_bounds = array<i64: 8, 1>}, {transform_indices = @transform_5, window_bounds = array<i64: 8, 128>}]} {
    %c0_i32 = arith.constant 0 : i32
    %0 = arith.cmpi eq, %arg0, %c0_i32 : i32
    %c0_i32_0 = arith.constant 0 : i32
    %1 = arith.cmpi eq, %arg1, %c0_i32_0 : i32
    %2 = arith.andi %0, %1 : i1
    %3 = arith.extui %2 : i1 to i32
    %c0_i32_1 = arith.constant 0 : i32
    %4 = arith.cmpi ne, %3, %c0_i32_1 : i32
    scf.if %4 {
      %cst_16 = arith.constant 0.000000e+00 : f32
      %29 = vector.broadcast %cst_16 : f32 to vector<8x1xf32>
      %c0_17 = arith.constant 0 : index
      %c0_18 = arith.constant 0 : index
      %30 = vector.load %arg8[%c0_17, %c0_18] : memref<8x1xf32, #tpu.memory_space<vmem>>, vector<8x1xf32>
      tpu.vector_store %arg8[%c0_17, %c0_18], %29 {strides = array<i32>} : memref<8x1xf32, #tpu.memory_space<vmem>>, vector<8x1xf32>,
      %cst_19 = arith.constant 0.000000e+00 : f32
      %31 = vector.broadcast %cst_19 : f32 to vector<8x1xf32>
      %c0_20 = arith.constant 0 : index
      %c0_21 = arith.constant 0 : index
      %32 = vector.load %arg9[%c0_20, %c0_21] : memref<8x1xf32, #tpu.memory_space<vmem>>, vector<8x1xf32>
      tpu.vector_store %arg9[%c0_20, %c0_21], %31 {strides = array<i32>} : memref<8x1xf32, #tpu.memory_space<vmem>>, vector<8x1xf32>,
    } else {
    }
    %c0 = arith.constant 0 : index
    %c0_2 = arith.constant 0 : index
    %5 = vector.load %arg3[%c0, %c0_2] : memref<8x16xf32, #tpu.memory_space<vmem>>, vector<8x16xf32>
    %c0_3 = arith.constant 0 : index
    %c0_4 = arith.constant 0 : index
    %6 = vector.load %arg2[%c0_3, %c0_4] : memref<16x128xf32, #tpu.memory_space<vmem>>, vector<16x128xf32>
    %cst = arith.constant dense<0.000000e+00> : vector<8x128xf32>
    %7 = tpu.matmul %5, %6, %cst {dimension_numbers = #tpu.dot_dimension_numbers<[1], [0], [0], [1], [0, 0, 1, 1], [], []>} : vector<8x16xf32>, vector<16x128xf32>, vector<8x128xf32> -> vector<8x128xf32>
    %c0_5 = arith.constant 0 : index
    %c0_6 = arith.constant 0 : index
    %8 = vector.load %arg4[%c0_5, %c0_6] : memref<8x1xf32, #tpu.memory_space<vmem>>, vector<8x1xf32>
    %9 = vector.broadcast %8 : vector<8x1xf32> to vector<8x128xf32>
    %10 = arith.addf %7, %9 : vector<8x128xf32>
    %cst_7 = arith.constant -3.40282347E+38 : f32
    %cst_8 = arith.constant 3.40282347E+38 : f32
    %11 = vector.broadcast %cst_7 : f32 to vector<8x128xf32>
    %12 = arith.maximumf %11, %10 : vector<8x128xf32>
    %13 = vector.broadcast %cst_8 : f32 to vector<8x128xf32>
    %14 = arith.minimumf %13, %12 : vector<8x128xf32>
    %15 = arith.cmpf one, %10, %10 : vector<8x128xf32>
    %cst_9 = arith.constant 0.000000e+00 : f32
    %16 = vector.broadcast %cst_9 : f32 to vector<8x128xf32>
    %17 = arith.select %15, %16, %14 : vector<8x128xi1>, vector<8x128xf32>
    %c0_i32_10 = arith.constant 0 : i32
    %18 = arith.cmpi eq, %arg0, %c0_i32_10 : i32
    %19 = arith.extui %18 : i1 to i32
    %c0_i32_11 = arith.constant 0 : i32
    %20 = arith.cmpi ne, %19, %c0_i32_11 : i32
    scf.if %20 {
      %29 = tpu.iota {dimensions = array<i32: 1>} : vector<8x128xi32>
      %c128_i32 = arith.constant 128 : i32
      %30 = arith.muli %arg1, %c128_i32 : i32
      %31 = vector.broadcast %30 : i32 to vector<8x128xi32>
      %32 = arith.addi %29, %31 : vector<8x128xi32>
      %c62_i32 = arith.constant 62 : i32
      %33 = vector.broadcast %c62_i32 : i32 to vector<8x128xi32>
      %34 = arith.cmpi slt, %32, %33 : vector<8x128xi32>
      %cst_16 = arith.constant 0.000000e+00 : f32
      %35 = vector.broadcast %cst_16 : f32 to vector<8x128xf32>
      %36 = arith.select %34, %17, %35 : vector<8x128xi1>, vector<8x128xf32>
      %c0_17 = arith.constant 0 : index
      %c0_18 = arith.constant 0 : index
      %37 = vector.load %arg8[%c0_17, %c0_18] : memref<8x1xf32, #tpu.memory_space<vmem>>, vector<8x1xf32>
      %cst_19 = arith.constant dense<0.000000e+00> : vector<8xf32>
      %38 = vector.multi_reduction <add>, %36, %cst_19 [1] : vector<8x128xf32> to vector<8xf32>
      %39 = vector.shape_cast %38 : vector<8xf32> to vector<8x1xf32>
      %40 = arith.addf %37, %39 : vector<8x1xf32>
      %c0_20 = arith.constant 0 : index
      %c0_21 = arith.constant 0 : index
      %41 = vector.load %arg8[%c0_20, %c0_21] : memref<8x1xf32, #tpu.memory_space<vmem>>, vector<8x1xf32>
      tpu.vector_store %arg8[%c0_20, %c0_21], %40 {strides = array<i32>} : memref<8x1xf32, #tpu.memory_space<vmem>>, vector<8x1xf32>,
      %c0_22 = arith.constant 0 : index
      %c0_23 = arith.constant 0 : index
      %42 = vector.load %arg9[%c0_22, %c0_23] : memref<8x1xf32, #tpu.memory_space<vmem>>, vector<8x1xf32>
      %43 = arith.mulf %36, %36 : vector<8x128xf32>
      %cst_24 = arith.constant dense<0.000000e+00> : vector<8xf32>
      %44 = vector.multi_reduction <add>, %43, %cst_24 [1] : vector<8x128xf32> to vector<8xf32>
      %45 = vector.shape_cast %44 : vector<8xf32> to vector<8x1xf32>
      %46 = arith.addf %42, %45 : vector<8x1xf32>
      %c0_25 = arith.constant 0 : index
      %c0_26 = arith.constant 0 : index
      %47 = vector.load %arg9[%c0_25, %c0_26] : memref<8x1xf32, #tpu.memory_space<vmem>>, vector<8x1xf32>
      tpu.vector_store %arg9[%c0_25, %c0_26], %46 {strides = array<i32>} : memref<8x1xf32, #tpu.memory_space<vmem>>, vector<8x1xf32>,
    } else {
    }
    %c1_i32 = arith.constant 1 : i32
    %21 = arith.cmpi eq, %arg0, %c1_i32 : i32
    %c0_i32_12 = arith.constant 0 : i32
    %22 = arith.cmpi eq, %arg1, %c0_i32_12 : i32
    %23 = arith.andi %21, %22 : i1
    %24 = arith.extui %23 : i1 to i32
    %c0_i32_13 = arith.constant 0 : i32
    %25 = arith.cmpi ne, %24, %c0_i32_13 : i32
    scf.if %25 {
      %c0_16 = arith.constant 0 : index
      %c0_17 = arith.constant 0 : index
      %29 = vector.load %arg8[%c0_16, %c0_17] : memref<8x1xf32, #tpu.memory_space<vmem>>, vector<8x1xf32>
      %cst_18 = arith.constant 0.0161290318 : f32
      %30 = vector.broadcast %cst_18 : f32 to vector<8x1xf32>
      %31 = arith.mulf %29, %30 : vector<8x1xf32>
      %c0_19 = arith.constant 0 : index
      %c0_20 = arith.constant 0 : index
      %32 = vector.load %arg9[%c0_19, %c0_20] : memref<8x1xf32, #tpu.memory_space<vmem>>, vector<8x1xf32>
      %cst_21 = arith.constant 0.0161290318 : f32
      %33 = vector.broadcast %cst_21 : f32 to vector<8x1xf32>
      %34 = arith.mulf %32, %33 : vector<8x1xf32>
      %35 = arith.mulf %31, %31 : vector<8x1xf32>
      %36 = arith.subf %34, %35 : vector<8x1xf32>
      %cst_22 = arith.constant 0.000000e+00 : f32
      %37 = vector.broadcast %cst_22 : f32 to vector<8x1xf32>
      %38 = arith.maximumf %36, %37 : vector<8x1xf32>
      %c0_23 = arith.constant 0 : index
      %c0_24 = arith.constant 0 : index
      %39 = vector.load %arg5[%c0_23, %c0_24] : memref<8x1xf32, #tpu.memory_space<vmem>>, vector<8x1xf32>
      %cst_25 = arith.constant 9.99999974E-6 : f32
      %40 = vector.broadcast %cst_25 : f32 to vector<8x1xf32>
      %41 = arith.addf %38, %40 : vector<8x1xf32>
      %42 = math.rsqrt %41 : vector<8x1xf32>
      %43 = arith.mulf %39, %42 : vector<8x1xf32>
      %c0_26 = arith.constant 0 : index
      %c0_27 = arith.constant 0 : index
      %44 = vector.load %arg10[%c0_26, %c0_27] : memref<8x1xf32, #tpu.memory_space<vmem>>, vector<8x1xf32>
      tpu.vector_store %arg10[%c0_26, %c0_27], %43 {strides = array<i32>} : memref<8x1xf32, #tpu.memory_space<vmem>>, vector<8x1xf32>,
      %c0_28 = arith.constant 0 : index
      %c0_29 = arith.constant 0 : index
      %45 = vector.load %arg6[%c0_28, %c0_29] : memref<8x1xf32, #tpu.memory_space<vmem>>, vector<8x1xf32>
      %46 = arith.mulf %31, %43 : vector<8x1xf32>
      %47 = arith.subf %45, %46 : vector<8x1xf32>
      %c0_30 = arith.constant 0 : index
      %c0_31 = arith.constant 0 : index
      %48 = vector.load %arg11[%c0_30, %c0_31] : memref<8x1xf32, #tpu.memory_space<vmem>>, vector<8x1xf32>
      tpu.vector_store %arg11[%c0_30, %c0_31], %47 {strides = array<i32>} : memref<8x1xf32, #tpu.memory_space<vmem>>, vector<8x1xf32>,
    } else {
    }
    %c1_i32_14 = arith.constant 1 : i32
    %26 = arith.cmpi eq, %arg0, %c1_i32_14 : i32
    %27 = arith.extui %26 : i1 to i32
    %c0_i32_15 = arith.constant 0 : i32
    %28 = arith.cmpi ne, %27, %c0_i32_15 : i32
    scf.if %28 {
      %c0_16 = arith.constant 0 : index
      %c0_17 = arith.constant 0 : index
      %29 = vector.load %arg10[%c0_16, %c0_17] : memref<8x1xf32, #tpu.memory_space<vmem>>, vector<8x1xf32>
      %30 = vector.broadcast %29 : vector<8x1xf32> to vector<8x128xf32>
      %31 = arith.mulf %17, %30 : vector<8x128xf32>
      %c0_18 = arith.constant 0 : index
      %c0_19 = arith.constant 0 : index
      %32 = vector.load %arg11[%c0_18, %c0_19] : memref<8x1xf32, #tpu.memory_space<vmem>>, vector<8x1xf32>
      %33 = vector.broadcast %32 : vector<8x1xf32> to vector<8x128xf32>
      %34 = arith.addf %31, %33 : vector<8x128xf32>
      %cst_20 = arith.constant -3.40282347E+38 : f32
      %cst_21 = arith.constant 3.40282347E+38 : f32
      %35 = vector.broadcast %cst_20 : f32 to vector<8x128xf32>
      %36 = arith.maximumf %35, %34 : vector<8x128xf32>
      %37 = vector.broadcast %cst_21 : f32 to vector<8x128xf32>
      %38 = arith.minimumf %37, %36 : vector<8x128xf32>
      %39 = arith.cmpf one, %34, %34 : vector<8x128xf32>
      %cst_22 = arith.constant 0.000000e+00 : f32
      %40 = vector.broadcast %cst_22 : f32 to vector<8x128xf32>
      %41 = arith.select %39, %40, %38 : vector<8x128xi1>, vector<8x128xf32>
      %cst_23 = arith.constant 0.000000e+00 : f32
      %42 = vector.broadcast %cst_23 : f32 to vector<8x128xf32>
      %43 = arith.cmpf oge, %41, %42 : vector<8x128xf32>
      %cst_24 = arith.constant 0.00999999977 : f32
      %44 = vector.broadcast %cst_24 : f32 to vector<8x128xf32>
      %45 = arith.mulf %44, %41 : vector<8x128xf32>
      %46 = arith.select %43, %41, %45 : vector<8x128xi1>, vector<8x128xf32>
      %cst_25 = arith.constant -3.40282347E+38 : f32
      %cst_26 = arith.constant 3.40282347E+38 : f32
      %47 = vector.broadcast %cst_25 : f32 to vector<8x128xf32>
      %48 = arith.maximumf %47, %46 : vector<8x128xf32>
      %49 = vector.broadcast %cst_26 : f32 to vector<8x128xf32>
      %50 = arith.minimumf %49, %48 : vector<8x128xf32>
      %51 = arith.cmpf one, %46, %46 : vector<8x128xf32>
      %cst_27 = arith.constant 0.000000e+00 : f32
      %52 = vector.broadcast %cst_27 : f32 to vector<8x128xf32>
      %53 = arith.select %51, %52, %50 : vector<8x128xi1>, vector<8x128xf32>
      %c0_28 = arith.constant 0 : index
      %c0_29 = arith.constant 0 : index
      %54 = vector.load %arg7[%c0_28, %c0_29] : memref<8x128xf32, #tpu.memory_space<vmem>>, vector<8x128xf32>
      tpu.vector_store %arg7[%c0_28, %c0_29], %53 {strides = array<i32>} : memref<8x128xf32, #tpu.memory_space<vmem>>, vector<8x128xf32>,
    } else {
    }
    return
  }
  func.func @transform_0(%arg0: i32, %arg1: i32) -> (i32, i32) {
    %c0_i32 = arith.constant 0 : i32
    %c0_i32_0 = arith.constant 0 : i32
    return %c0_i32, %arg1 : i32, i32
  }
  func.func @transform_1(%arg0: i32, %arg1: i32) -> (i32, i32) {
    %c0_i32 = arith.constant 0 : i32
    %c0_i32_0 = arith.constant 0 : i32
    %c0_i32_1 = arith.constant 0 : i32
    return %c0_i32, %c0_i32_0 : i32, i32
  }
  func.func @transform_2(%arg0: i32, %arg1: i32) -> (i32, i32) {
    %c0_i32 = arith.constant 0 : i32
    %c0_i32_0 = arith.constant 0 : i32
    %c0_i32_1 = arith.constant 0 : i32
    return %c0_i32, %c0_i32_0 : i32, i32
  }
  func.func @transform_3(%arg0: i32, %arg1: i32) -> (i32, i32) {
    %c0_i32 = arith.constant 0 : i32
    %c0_i32_0 = arith.constant 0 : i32
    %c0_i32_1 = arith.constant 0 : i32
    return %c0_i32, %c0_i32_0 : i32, i32
  }
  func.func @transform_4(%arg0: i32, %arg1: i32) -> (i32, i32) {
    %c0_i32 = arith.constant 0 : i32
    %c0_i32_0 = arith.constant 0 : i32
    %c0_i32_1 = arith.constant 0 : i32
    return %c0_i32, %c0_i32_0 : i32, i32
  }
  func.func @transform_5(%arg0: i32, %arg1: i32) -> (i32, i32) {
    %0 = arith.muli %arg1, %arg0 : i32
    %c0_i32 = arith.constant 0 : i32
    %c0_i32_0 = arith.constant 0 : i32
    return %c0_i32, %0 : i32, i32
  }
}

</mosaic_0001>

<bundles_post_ra>
// kernel: conv1d_block_with_activation.1
= control target key start
LH: loop header
LB: loop body
LE: loop exit
PB: predicated region body
PF: predicated region fallthrough
CT: control target
= control target key end

     0   :  { %s595_s18 = smov 0   ;;  %s597_s19 = smov 0   ;;  %s649_s0 = inlined_call_operand.vmem [shape: f32[16,128], index: 0, kind: input, shape index: {}]   ;;  %s650_s1 = inlined_call_operand.vmem [shape: f32[8,16], index: 1, kind: input, shape index: {}]   ;;  %s651_s2 = inlined_call_operand.vmem [shape: f32[8,1], index: 2, kind: input, shape index: {}]   ;;  %s652_s3 = inlined_call_operand.vmem [shape: f32[8,1], index: 3, kind: input, shape index: {}]   ;;  %s653_s4 = inlined_call_operand.vmem [shape: f32[8,1], index: 4, kind: input, shape index: {}]   ;;  %s654_s5 = inlined_call_operand.vmem [shape: f32[8,128], index: 5, kind: output, shape index: {}]  }
   0x1   :  { %s599_s20 = smov 0  }
   0x2 LB: > { %s27_s21 = sadd.s32 1, %s554_s19  ;;  %p478_p0 = scmp.ge.s32.totalorder %s558_s20, 1  ;;  %s558_s20 = sphi %s599_s20, %s15_s20   ;;  %s554_s19 = sphi %s597_s19, %s656_s19   ;;  %s550_s18 = sphi %s595_s18, %s655_s18  }
   0x3   : > { %p29_p1 = scmp.ge.s32.totalorder %s27_s21, 2  ;;  %p200_p2 = scmp.lt.s32.totalorder %s558_s20, 3 }
   0x5   : > { %s658_s21 = smov (%p29_p1, %s27_s21), 0  ;;  %p201_p3 = pnand %p478_p0, %p200_p2 }
   0x6   : > { %p237_p4 = scmp.eq.s32.totalorder (!%p201_p3), %s550_s18, 0 }
   0x7   : > { %204 = sbr.rel (%p201_p3) target bundleno = 556 (0x22c), region = 40 }
   0xc   : > { %242 = sbr.rel (!%p237_p4) target bundleno = 17 (0x11), region = 44  ;;  %vm243_vm0 = vcmask (%p237_p4), 7168   ;;  %v560_v0 = vmov (%p237_p4), 0.0  }
   0xd   : > { %244 = vst.msk [vmem:[#allocation2] sm:$0xff] (%p237_p4), %vm243_vm0, %v560_v0  ;;  %245 = vst.msk [vmem:[#allocation3] sm:$0xff] (%p237_p4), %vm243_vm0, %v560_v0 }
  0x11 PF: > { %v248_v1 = vld [vmem:[%s649_s0 + $0x8] sm:$0xff]  ;;  %v561_v2 = vmov 0.0   ;;  %v247_v3 = vld [vmem:[%s649_s0] sm:$0xff]  ;;  %vm562_vm1 = vmmov 0   ;;  %vm255_vm2 = vcmask 130048   ;;  %v563_v6 = vmov 0  }
  0x12   : > { %496 = vmatprep.subr.mxu0 %v561_v2  ;;  %500 = vmatprep.mubr.msk.f32.mxu0 %vm562_vm1, %v561_v2  ;;  %v249_v4 = vld [vmem:[%s651_s2] sm:$0xff]  ;;  %p482_p5 = scmp.ne.s32.totalorder %s550_s18, 0 }
  0x13   : > { %497 = vmatpush3.msra.mxu0 %v248_v1  ;;  %v246_v5 = vld [vmem:[%s650_s1] sm:$0xff]  ;;  %532 = vset.pattern.permute.xlu0 %v563_v6 }
  0x14   : > { %498 = vmatprep.subr.mxu0 %v561_v2  ;;  %252 = vperm.xlu0 %532, %v249_v4  }
  0x15   : > { %499 = vmatpush3.msra.mxu0 %v247_v3 }
  0x16   : > { %501 = vmatmul.mubr.msk.f32.vlgmr.msra.gmra.mxu0 %vm255_vm2, %v246_v5 }
  0x8f   : > { %v253_v7 = vpop.permute.xlu0 %252 }
  0xd6   : > { %v325_v8 = vpop.f32.mrf.mxu0 }
  0xd7   : > { %v326_v9 = vadd.f32 %v325_v8, %v253_v7  ;;  %335 = sbr.rel (%p482_p5) target bundleno = 371 (0x173), region = 48 }
  0xd8   : > { %v502_v10 = vpop.f32.mrf.mxu0 }
  0xd9   : > { %v481_v11 = vclamps-f32 %v326_v9, 3.4028235e+38  ;;  %vm331_vm3 = vcmp.ne.f32.partialorder %v326_v9, %v326_v9 }
  0xdb   : > { %v332_v12 = vsel %vm331_vm3, 0.0, %v481_v11 }
  0xdc   : > { %v336_v13 = vlaneseq  ;;  %v343_v17 = vld [vmem:[#allocation2] sm:$0xff]  ;;  %vm347_vm5 = vcmask 7168   ;;  %v349_v20 = vld [vmem:[#allocation3] sm:$0xff] }
  0xde   : > { %v337_v14 = vand.u32 127, %v336_v13 }
  0xe0   : > { %vm341_vm4 = vcmp.lt.s32.totalorder %v337_v14, 62 }
  0xe1   : > { %v342_v15 = vsel %vm341_vm4, %v332_v12, 0.0 }
  0xe2   : > { %344 = vadd.xlane.f32.xlu0 %v342_v15  ;;  %v350_v16 = vmul.f32 %v342_v15, %v342_v15 }
  0xe6   : > { %351 = vadd.xlane.f32.xlu0 %v350_v16 }
 0x16b   : > { %v345_v18 = vpop.xlane.xlu0 %344 }
 0x16c   : > { %v346_v19 = vadd.f32 %v345_v18, %v343_v17 }
 0x16e   : > { %348 = vst.msk [vmem:[#allocation2] sm:$0xff] %vm347_vm5, %v346_v19 }
 0x16f   : > { %v352_v21 = vpop.xlane.xlu0 %351 }
 0x170   : > { %v353_v22 = vadd.f32 %v352_v21, %v349_v20 }
 0x172   : > { %354 = vst.msk [vmem:[#allocation3] sm:$0xff] %vm347_vm5, %v353_v22 }
 0x173 PF: > { %p355_p6 = scmp.eq.s32.totalorder %s550_s18, 1 }
 0x174   : > { %v367_v31 = vld [vmem:[%s652_s3] sm:$0xff] (%p355_p6)  ;;  %vm371_vm6 = vcmask (%p355_p6), 7168  }
 0x175   : > { %359 = sbr.rel (!%p355_p6) target bundleno = 407 (0x197), region = 52  ;;  %v360_v23 = vld [vmem:[#allocation2] sm:$0xff] (%p355_p6) }
 0x176   : > { %v361_v25 = vmul.f32 (%p355_p6), 0.016129032, %v360_v23  ;;  %v373_v34 = vld [vmem:[%s653_s4] sm:$0xff] (%p355_p6) }
 0x178   : > { %v364_v27 = vmul.f32 (%p355_p6), %v361_v25, %v361_v25 }
 0x179   : > { %v362_v24 = vld [vmem:[#allocation3] sm:$0xff] (%p355_p6) }
 0x17a   : > { %v363_v26 = vmul.f32 0.016129032, %v362_v24 }
 0x17c   : > { %v365_v28 = vsub.f32 %v363_v26, %v364_v27 }
 0x17e   : > { %v366_v29 = vmax.f32 %v365_v28, 0.0 }
 0x180   : > { %v368_v30 = vadd.f32 1e-05, %v366_v29 }
 0x182   : > { %533 = vrsqrt.f32 %v368_v30 }
 0x18f   : > { %v534_v32 = vpop.eup %533 }
 0x190   : > { %v370_v33 = vmul.f32 %v534_v32, %v367_v31 }
 0x192   : > { %372 = vst.msk [vmem:[#allocation4] sm:$0xff] %vm371_vm6, %v370_v33  ;;  %v374_v35 = vmul.f32 %v370_v33, %v361_v25 }
 0x194   : > { %v375_v36 = vsub.f32 %v373_v34, %v374_v35 }
 0x196   : > { %376 = vst.msk [vmem:[#allocation5] sm:$0xff] %vm371_vm6, %v375_v36 }
 0x197 PF: > { %p484_p7 = scmp.ne.s32.totalorder %s550_s18, 1 }
 0x199   : > { %379 = sbr.rel (%p484_p7) target bundleno = 556 (0x22c), region = 56 }
 0x19e   : > { %v380_v37 = vld [vmem:[#allocation4] sm:$0xff]  ;;  %v564_v38 = vmov 0   ;;  %v387_v39 = vld [vmem:[#allocation5] sm:$0xff] }
 0x19f   : > { %535 = vset.pattern.permute.xlu0 %v564_v38 }
 0x1a0   : > { %383 = vperm.xlu0 %535, %v380_v37  }
 0x1a4   : > { %390 = vperm.xlu0 %535, %v387_v39  }
 0x21b   : > { %v384_v40 = vpop.permute.xlu0 %383 }
 0x21c   : > { %v386_v41 = vmul.f32 %v384_v40, %v332_v12 }
 0x21f   : > { %v391_v42 = vpop.permute.xlu0 %390 }
 0x220   : > { %v393_v43 = vadd.f32 %v391_v42, %v386_v41 }
 0x222   : > { %v485_v44 = vclamps-f32 %v393_v43, 3.4028235e+38  ;;  %vm396_vm7 = vcmp.ne.f32.partialorder %v393_v43, %v393_v43 }
 0x224   : > { %v397_v45 = vsel %vm396_vm7, 0.0, %v485_v44 }
 0x225   : > { %vm398_vm8 = vcmp.ge.f32.partialorder %v397_v45, 0.0  ;;  %v399_v46 = vmul.f32 0.01, %v397_v45 }
 0x227   : > { %v400_v47 = vsel %vm398_vm8, %v397_v45, %v399_v46 }
 0x228   : > { %v486_v48 = vclamps-f32 %v400_v47, 3.4028235e+38  ;;  %vm403_vm9 = vcmp.ne.f32.partialorder %v400_v47, %v400_v47 }
 0x22a   : > { %v404_v49 = vsel %vm403_vm9, 0.0, %v486_v48 }
 0x22b   : > { %405 = vst [vmem:[%s654_s5] sm:$0xff] %v404_v49 }
 0x22c PF: > { %s15_s20 = sadd.s32 1, %s558_s20   ;;  %s655_s18 = smov %s554_s19 }
 0x22d   : > { %p12_p8 = scmp.ge.s32.totalorder %s15_s20, 4   ;;  %s656_s19 = smov %s658_s21 }
 0x22f   :  { %14 = sbr.rel (!%p12_p8) target bundleno = 2 (0x2), region = 86 }

</bundles_post_ra>
